<compile_context>
chip_gen: v7x
topology: tpu7x:2x2x1
jax: 0.10.0
libtpu: 0.0.40
codegen_flags: <defaults>
</compile_context>

<pallas_src>
import functools

import jax
import jax.numpy as jnp
import numpy as np
from jax.experimental import pallas as pl
from jax.experimental.pallas import tpu as pltpu


def _round_up(v, m):
    return (v + m - 1) // m * m


def _vmem_capacity_bytes():
    """Generation-aware VMEM capacity; conservative 64 MiB if unknown."""
    try:
        return int(pltpu.get_tpu_info().vmem_capacity_bytes)
    except Exception:
        return 64 * 1024 * 1024


# -----------------------------------------------------------------------------
# fused path: one kernel per slab (pools -> gates -> rescale), x read once
# -----------------------------------------------------------------------------
def _fused_kernel(w1_ref, w3_ref, w2_ref, b2_ref, x_ref, o_ref,
                  padt_sum_ref, padt_max_ref, padavg_ref, padmax_ref,
                  *, f_dim, lpad):
    """x_ref/o_ref: (T, HW) with HW = S*F flattened row-major (s major).
    w1:(3,) ECA conv1 taps; w3:(2,) [max, avg] mix; w2:(18,) 2x3x3 Conv2d
    weights; b2:(1,) bias.  Scratches hold zero-padded pooled stats."""
    t, hw = x_ref.shape
    x = x_ref[...]
    xf = x.astype(jnp.float32)

    # ---- pools (f32 sums, native-dtype maxes) --------------------------------
    sum_t = jnp.sum(xf, axis=1, keepdims=True)                        # (T, 1)
    max_t = jnp.max(x, axis=1, keepdims=True).astype(jnp.float32)     # (T, 1)
    avg_sf = jnp.sum(xf, axis=0, keepdims=True) * (1.0 / t)           # (1, HW)
    max_sf = jnp.max(x, axis=0, keepdims=True).astype(jnp.float32)    # (1, HW)

    # ---- temporal (ECA) gate: k=3 zero-padded conv along T -------------------
    # Data lives at sublane offset 8 (aligned store); rows 7 / 8+t stay zero.
    padt_sum_ref[...] = jnp.zeros_like(padt_sum_ref)
    padt_max_ref[...] = jnp.zeros_like(padt_max_ref)
    padt_sum_ref[8:8 + t, :] = sum_t
    padt_max_ref[8:8 + t, :] = max_t

    def tconv(ref):
        return (w1_ref[0] * ref[7:7 + t, :] + w1_ref[1] * ref[8:8 + t, :]
                + w1_ref[2] * ref[9:9 + t, :])

    y_avg = tconv(padt_sum_ref) * (1.0 / hw)          # fold the mean's 1/HW
    y_max = tconv(padt_max_ref)
    gate_t = 0.5 * jax.nn.sigmoid(w3_ref[0] * y_max + w3_ref[1] * y_avg)

    # ---- spatial-frequency gate: 3x3 'same' conv on flattened (S,F) maps -----
    # Padded flat layout: [lpad zeros | map (HW) | >=lpad zeros].  lpad is a
    # multiple of 128 and > F, so the data store is lane-aligned and the row
    # (s) boundary is handled by the zero pads; the column (f) boundary is
    # handled with iota masks.
    width = padavg_ref.shape[1]
    tail_start = lpad + (hw // 128) * 128
    zeros_l = jnp.zeros((1, lpad), jnp.float32)
    zeros_t = jnp.zeros((1, width - tail_start), jnp.float32)
    for pref, val in ((padavg_ref, avg_sf), (padmax_ref, max_sf)):
        pref[:, 0:lpad] = zeros_l
        pref[:, tail_start:width] = zeros_t
        pref[:, lpad:lpad + hw] = val

    f_idx = jax.lax.broadcasted_iota(jnp.int32, (1, hw), 1) % f_dim
    acc = jnp.zeros((1, hw), jnp.float32) + b2_ref[0]
    for ci, pref in enumerate((padavg_ref, padmax_ref)):   # ch0=avg, ch1=max
        for ki in range(3):
            di = ki - 1
            for kj in range(3):
                dj = kj - 1
                start = lpad + di * f_dim + dj
                tap = pref[:, start:start + hw]
                if dj == -1:
                    tap = jnp.where(f_idx >= 1, tap, 0.0)
                elif dj == 1:
                    tap = jnp.where(f_idx < f_dim - 1, tap, 0.0)
                acc = acc + w2_ref[ci * 9 + ki * 3 + kj] * tap
    gate_sf = 0.5 * jax.nn.sigmoid(acc)                                # (1, HW)

    # ---- rescale: out = x * (0.5*gate_t + 0.5*gate_sf) -----------------------
    o_ref[...] = (xf * (gate_t + gate_sf)).astype(o_ref.dtype)


def _forward_fused(x_flat, w1, w3, w2, b2, shapes, vmem_cap, lpad):
    N, T, S, F = shapes
    HW = S * F
    return pl.pallas_call(
        functools.partial(_fused_kernel, f_dim=F, lpad=lpad),
        out_shape=jax.ShapeDtypeStruct((N, T, HW), x_flat.dtype),
        grid=(N,),
        in_specs=[
            pl.BlockSpec(memory_space=pltpu.MemorySpace.SMEM),   # w1 (3,)
            pl.BlockSpec(memory_space=pltpu.MemorySpace.SMEM),   # w3 (2,)
            pl.BlockSpec(memory_space=pltpu.MemorySpace.SMEM),   # w2 (18,)
            pl.BlockSpec(memory_space=pltpu.MemorySpace.SMEM),   # b2 (1,)
            pl.BlockSpec((None, T, HW), lambda n: (n, 0, 0)),
        ],
        out_specs=pl.BlockSpec((None, T, HW), lambda n: (n, 0, 0)),
        scratch_shapes=[
            pltpu.VMEM((T + 16, 1), jnp.float32),
            pltpu.VMEM((T + 16, 1), jnp.float32),
            pltpu.VMEM((1, 2 * lpad + HW), jnp.float32),
            pltpu.VMEM((1, 2 * lpad + HW), jnp.float32),
        ],
        compiler_params=pltpu.CompilerParams(
            dimension_semantics=("parallel",),
            vmem_limit_bytes=int(0.8 * vmem_cap)),
    )(w1, w3, w2, b2, x_flat)


# -----------------------------------------------------------------------------
# streaming fallback (slab too big for VMEM): stats -> gates -> rescale
# -----------------------------------------------------------------------------
def _stats_kernel(x_ref, sum_t_ref, max_t_ref, avg_sf_ref, max_sf_ref,
                  *, hw, tile):
    """x_ref: (T, tile).  Accumulate per-t sum/max over HW tiles (resident
    output blocks) and write the T-pooled mean/max for this tile.  When the
    last tile is ragged, mask the invalid lanes (0 for sums, -inf for maxes)."""
    j = pl.program_id(1)
    t = x_ref.shape[0]
    x = x_ref[...]
    xf = x.astype(jnp.float32)

    if hw % tile != 0:                                  # static: ragged tiles
        lane = jax.lax.broadcasted_iota(jnp.int32, x_ref.shape, 1)
        valid = (j * tile + lane) < hw
        x_sum = jnp.where(valid, xf, 0.0)
        x_max = jnp.where(valid, xf, -jnp.inf)
    else:
        x_sum = xf
        x_max = xf

    part_sum = jnp.sum(x_sum, axis=1, keepdims=True)    # (T, 1)
    part_max = jnp.max(x_max, axis=1, keepdims=True)    # (T, 1)

    @pl.when(j == 0)
    def _init():
        sum_t_ref[...] = part_sum
        max_t_ref[...] = part_max

    @pl.when(j > 0)
    def _accum():
        sum_t_ref[...] = sum_t_ref[...] + part_sum
        max_t_ref[...] = jnp.maximum(max_t_ref[...], part_max)

    # T-pooled maps for this lane tile (complete per tile).
    avg_sf_ref[...] = jnp.sum(x_sum, axis=0, keepdims=True) * (1.0 / t)
    max_sf_ref[...] = jnp.max(x_max, axis=0, keepdims=True)


def _gate_kernel(w1_ref, w3_ref, w2_ref, b2_ref,
                 sum_t_ref, max_t_ref, avg_sf_ref, max_sf_ref,
                 gate_t_ref, gate_sf_ref, *, hw):
    """Tiny per-slab gate math on zero-padded pooled stats.  Stores
    0.5*sigmoid(...) so the rescale pass is a single add + mul per element."""
    t = gate_t_ref.shape[0]
    s, f = gate_sf_ref.shape
    inv_hw = 1.0 / hw

    def conv1d_k3(ref, scale):
        prv = ref[0:t, :] * scale
        cur = ref[1:t + 1, :] * scale
        nxt = ref[2:t + 2, :] * scale
        return w1_ref[0] * prv + w1_ref[1] * cur + w1_ref[2] * nxt

    y_avg = conv1d_k3(sum_t_ref, inv_hw)
    y_max = conv1d_k3(max_t_ref, 1.0)
    gate_t_ref[...] = 0.5 * jax.nn.sigmoid(w3_ref[0] * y_max + w3_ref[1] * y_avg)

    acc = jnp.zeros((s, f), jnp.float32) + b2_ref[0]
    for ci, ch_ref in enumerate((avg_sf_ref, max_sf_ref)):  # ch0=avg, ch1=max
        for ki in range(3):
            for kj in range(3):
                w = w2_ref[ci * 9 + ki * 3 + kj]
                acc = acc + w * ch_ref[ki:ki + s, kj:kj + f]
    gate_sf_ref[...] = 0.5 * jax.nn.sigmoid(acc)


def _rescale_kernel(x_ref, gate_t_ref, gate_sf_ref, o_ref):
    """out = x * (gate_t + gate_sf); gates already carry the 0.5 factor."""
    xf = x_ref[...].astype(jnp.float32)                   # (T, tile)
    g = gate_t_ref[...] + gate_sf_ref[...]                # (T,1)+(1,tile)
    o_ref[...] = (xf * g).astype(o_ref.dtype)


def _choose_hw_tile(hw, t, itemsize, target_block_bytes):
    """Lane-dense HW tile sized by bytes of the input dtype.  Full-HW blocks
    are always legal; otherwise pick a multiple of 128 (ragged last tile is
    handled by masking in the stats kernel, so divisibility is not required)."""
    if t * hw * itemsize <= target_block_bytes or hw <= 256:
        return hw
    lanes = max(128, (target_block_bytes // (itemsize * t)) // 128 * 128)
    return hw if lanes >= hw else lanes


def _forward_streaming(x_flat, w1, w3, w2, b2, shapes, vmem_cap, hw_tile):
    N, T, S, F = shapes
    HW = S * F
    itemsize = x_flat.dtype.itemsize
    target_block_bytes = max(2 * 1024 * 1024, vmem_cap // 10)
    tile = (min(hw_tile, HW) if hw_tile is not None
            else _choose_hw_tile(HW, T, itemsize, target_block_bytes))
    J = pl.cdiv(HW, tile)
    vmem_limit = int(0.75 * vmem_cap)

    # ---- pass 1: pooled statistics -------------------------------------------
    sum_t, max_t, avg_sf, max_sf = pl.pallas_call(
        functools.partial(_stats_kernel, hw=HW, tile=tile),
        out_shape=(
            jax.ShapeDtypeStruct((N, T, 1), jnp.float32),
            jax.ShapeDtypeStruct((N, T, 1), jnp.float32),
            jax.ShapeDtypeStruct((N, 1, HW), jnp.float32),
            jax.ShapeDtypeStruct((N, 1, HW), jnp.float32),
        ),
        grid=(N, J),
        in_specs=[pl.BlockSpec((None, T, tile), lambda n, j: (n, 0, j))],
        out_specs=(
            pl.BlockSpec((None, T, 1), lambda n, j: (n, 0, 0)),
            pl.BlockSpec((None, T, 1), lambda n, j: (n, 0, 0)),
            pl.BlockSpec((None, 1, tile), lambda n, j: (n, 0, j)),
            pl.BlockSpec((None, 1, tile), lambda n, j: (n, 0, j)),
        ),
        compiler_params=pltpu.CompilerParams(
            dimension_semantics=("parallel", "arbitrary"),
            vmem_limit_bytes=vmem_limit),
    )(x_flat)

    # zero-pad the tiny pooled stats so the gate convs are static slices
    sum_t_pad = jnp.pad(sum_t, ((0, 0), (1, 1), (0, 0)))
    max_t_pad = jnp.pad(max_t, ((0, 0), (1, 1), (0, 0)))
    avg_sf_pad = jnp.pad(avg_sf.reshape(N, S, F), ((0, 0), (1, 1), (1, 1)))
    max_sf_pad = jnp.pad(max_sf.reshape(N, S, F), ((0, 0), (1, 1), (1, 1)))

    # ---- pass 2: per-slab gates -----------------------------------------------
    gate_t, gate_sf = pl.pallas_call(
        functools.partial(_gate_kernel, hw=HW),
        out_shape=(
            jax.ShapeDtypeStruct((N, T, 1), jnp.float32),
            jax.ShapeDtypeStruct((N, S, F), jnp.float32),
        ),
        grid=(N,),
        in_specs=[
            pl.BlockSpec(memory_space=pltpu.MemorySpace.SMEM),   # w1
            pl.BlockSpec(memory_space=pltpu.MemorySpace.SMEM),   # w3
            pl.BlockSpec(memory_space=pltpu.MemorySpace.SMEM),   # w2
            pl.BlockSpec(memory_space=pltpu.MemorySpace.SMEM),   # b2
            pl.BlockSpec((None, T + 2, 1), lambda n: (n, 0, 0)),
            pl.BlockSpec((None, T + 2, 1), lambda n: (n, 0, 0)),
            pl.BlockSpec((None, S + 2, F + 2), lambda n: (n, 0, 0)),
            pl.BlockSpec((None, S + 2, F + 2), lambda n: (n, 0, 0)),
        ],
        out_specs=(
            pl.BlockSpec((None, T, 1), lambda n: (n, 0, 0)),
            pl.BlockSpec((None, S, F), lambda n: (n, 0, 0)),
        ),
        compiler_params=pltpu.CompilerParams(
            dimension_semantics=("parallel",)),
    )(w1, w3, w2, b2, sum_t_pad, max_t_pad, avg_sf_pad, max_sf_pad)

    # ---- pass 3: streaming rescale (no cross-J dependence -> fully parallel) --
    out = pl.pallas_call(
        _rescale_kernel,
        out_shape=jax.ShapeDtypeStruct((N, T, HW), x_flat.dtype),
        grid=(N, J),
        in_specs=[
            pl.BlockSpec((None, T, tile), lambda n, j: (n, 0, j)),
            pl.BlockSpec((None, T, 1), lambda n, j: (n, 0, 0)),
            pl.BlockSpec((None, 1, tile), lambda n, j: (n, 0, j)),
        ],
        out_specs=pl.BlockSpec((None, T, tile), lambda n, j: (n, 0, j)),
        compiler_params=pltpu.CompilerParams(
            dimension_semantics=("parallel", "parallel"),
            vmem_limit_bytes=vmem_limit),
    )(x_flat, gate_t, gate_sf.reshape(N, 1, HW))
    return out


# -----------------------------------------------------------------------------
# wrapper
# -----------------------------------------------------------------------------
def sst_attention_forward(x, eca_conv1_w, eca_conv3_w, conv2d_w, conv2d_b,
                          *, force_streaming=False, hw_tile=None):
    """x: (B, C, T, S, F).  eca_conv1_w: (1,1,3), eca_conv3_w: (1,2,1),
    conv2d_w: (1,2,3,3), conv2d_b: (1,)."""
    B, C, T, S, F = x.shape
    N, HW = B * C, S * F
    x_flat = x.reshape(N, T, HW)                       # free, row-major merge

    w1 = eca_conv1_w.reshape(-1).astype(jnp.float32)   # (3,)
    w3 = eca_conv3_w.reshape(-1).astype(jnp.float32)   # (2,)
    w2 = conv2d_w.reshape(-1).astype(jnp.float32)      # (18,)
    b2 = conv2d_b.reshape(-1).astype(jnp.float32)      # (1,)

    vmem_cap = _vmem_capacity_bytes()
    itemsize = x.dtype.itemsize
    lpad = _round_up(F + 1, 128)
    slab_in = T * HW * itemsize
    slab_f32 = T * HW * 4
    fused_need = (4 * slab_in + 4 * slab_f32 + 2 * (2 * lpad + HW) * 4
                  + (2 << 20))
    use_fused = (not force_streaming) and fused_need <= int(0.75 * vmem_cap)

    shapes = (N, T, S, F)
    if use_fused:
        out = _forward_fused(x_flat, w1, w3, w2, b2, shapes, vmem_cap, lpad)
    else:
        out = _forward_streaming(x_flat, w1, w3, w2, b2, shapes, vmem_cap,
                                 hw_tile)
    return out.reshape(B, C, T, S, F)


# -----------------------------------------------------------------------------
# pure-JAX reference (mirrors the PyTorch forward)
# -----------------------------------------------------------------------------
def sst_attention_reference(x, eca_conv1_w, eca_conv3_w, conv2d_w, conv2d_b):
    B, C, T, S, F = x.shape
    xr = x.reshape(B * C, T, S, F).astype(jnp.float32)
    w1 = eca_conv1_w.reshape(-1).astype(jnp.float32)
    w3 = eca_conv3_w.reshape(-1).astype(jnp.float32)

    avg_t = jnp.mean(xr, axis=(2, 3))                      # (N, T)
    max_t = jnp.max(xr, axis=(2, 3))

    def conv1d_k3(v):
        vp = jnp.pad(v, ((0, 0), (1, 1)))
        return w1[0] * vp[:, :-2] + w1[1] * vp[:, 1:-1] + w1[2] * vp[:, 2:]

    y = w3[0] * conv1d_k3(max_t) + w3[1] * conv1d_k3(avg_t)
    gate_t = jax.nn.sigmoid(y)
    tem_att = xr * gate_t[:, :, None, None]

    avg_sf = jnp.mean(xr, axis=1)
    max_sf = jnp.max(xr, axis=1)
    inp = jnp.stack([avg_sf, max_sf], axis=1)              # (N, 2, S, F)
    conv = jax.lax.conv_general_dilated(
        inp, conv2d_w.astype(jnp.float32), window_strides=(1, 1),
        padding="SAME", dimension_numbers=("NCHW", "OIHW", "NCHW"),
        precision=jax.lax.Precision.HIGHEST)
    conv = conv + conv2d_b.reshape(1, 1, 1, 1).astype(jnp.float32)
    gate_sf = jax.nn.sigmoid(conv)
    sf_att = xr * gate_sf

    res = 0.5 * tem_att + 0.5 * sf_att
    return res.reshape(B, C, T, S, F).astype(x.dtype)


if __name__ == "__main__":
    key = jax.random.PRNGKey(0)
    kx, k1, k3, kc, kb, kx2 = jax.random.split(key, 6)

    # Deterministic synthetic weights (PyTorch parameter shapes).
    eca_conv1_w = jax.random.normal(k1, (1, 1, 3), dtype=jnp.float32) * 0.5
    eca_conv3_w = jax.random.normal(k3, (1, 2, 1), dtype=jnp.float32) * 0.5
    conv2d_w = jax.random.normal(kc, (1, 2, 3, 3), dtype=jnp.float32) * 0.3
    conv2d_b = jax.random.normal(kb, (1,), dtype=jnp.float32) * 0.1

    def check(xx, **kw):
        out = sst_attention_forward(xx, eca_conv1_w, eca_conv3_w, conv2d_w,
                                    conv2d_b, **kw)
        out = jax.block_until_ready(out)
        ref = sst_attention_reference(xx, eca_conv1_w, eca_conv3_w, conv2d_w,
                                      conv2d_b)
        np.testing.assert_allclose(np.asarray(out), np.asarray(ref),
                                   rtol=1e-4, atol=1e-4)

    # (batch, channel, temporal, spatial, frequency); temporal == temSize.
    # Fused single-pass path and the streaming fallback at the same shape.
    x = jax.random.normal(kx, (2, 2, 4, 8, 16), dtype=jnp.float32)
    check(x)
    check(x, force_streaming=True)

    # HW (= S*F = 320) not a multiple of 128: fused path, and the streaming
    # fallback forced onto ragged 128-lane tiles (exercises the edge masking).
    x2 = jax.random.normal(kx2, (2, 2, 4, 8, 40), dtype=jnp.float32)
    check(x2)
    check(x2, force_streaming=True, hw_tile=128)

    print("KERNEL_OK")
</pallas_src>

<mosaic_0001>
module attributes {stable_mosaic.version = 11 : i64} {
  func.func @_fused_kernel(%arg0: i32, %arg1: memref<3xf32, #tpu.memory_space<smem>>, %arg2: memref<2xf32, #tpu.memory_space<smem>>, %arg3: memref<18xf32, #tpu.memory_space<smem>>, %arg4: memref<1xf32, #tpu.memory_space<smem>>, %arg5: memref<1x4x128xf32, #tpu.memory_space<vmem>>, %arg6: memref<1x4x128xf32, #tpu.memory_space<vmem>>, %arg7: memref<20x1xf32, #tpu.memory_space<vmem>>, %arg8: memref<20x1xf32, #tpu.memory_space<vmem>>, %arg9: memref<1x384xf32, #tpu.memory_space<vmem>>, %arg10: memref<1x384xf32, #tpu.memory_space<vmem>>) attributes {dimension_semantics = [#tpu.dimension_semantics<parallel>], iteration_bounds = array<i64: 4>, scalar_prefetch = 0 : i64, scratch_operands = 4 : i64, tpu.core_type = #tpu.core_type<tc>, window_params = [{transform_indices = @transform_0, window_bounds = array<i64: 3>}, {transform_indices = @transform_1, window_bounds = array<i64: 2>}, {transform_indices = @transform_2, window_bounds = array<i64: 18>}, {transform_indices = @transform_3, window_bounds = array<i64: 1>}, {transform_indices = @transform_4, window_bounds = array<i64: 1, 4, 128>}, {transform_indices = @transform_5, window_bounds = array<i64: 1, 4, 128>}]} {
    %c0 = arith.constant 0 : index
    %c0_0 = arith.constant 0 : index
    %c0_1 = arith.constant 0 : index
    %0 = vector.load %arg5[%c0, %c0_0, %c0_1] : memref<1x4x128xf32, #tpu.memory_space<vmem>>, vector<1x4x128xf32>
    %1 = vector.shape_cast %0 : vector<1x4x128xf32> to vector<4x128xf32>
    %cst = arith.constant dense<0.000000e+00> : vector<4xf32>
    %2 = vector.multi_reduction <add>, %1, %cst [1] : vector<4x128xf32> to vector<4xf32>
    %3 = vector.shape_cast %2 : vector<4xf32> to vector<4x1xf32>
    %cst_2 = arith.constant dense<0xFF800000> : vector<4xf32>
    %4 = vector.multi_reduction <maximumf>, %1, %cst_2 [1] : vector<4x128xf32> to vector<4xf32>
    %5 = vector.shape_cast %4 : vector<4xf32> to vector<4x1xf32>
    %cst_3 = arith.constant dense<0.000000e+00> : vector<128xf32>
    %6 = vector.multi_reduction <add>, %1, %cst_3 [0] : vector<4x128xf32> to vector<128xf32>
    %7 = vector.shape_cast %6 : vector<128xf32> to vector<1x128xf32>
    %cst_4 = arith.constant 2.500000e-01 : f32
    %8 = vector.broadcast %cst_4 : f32 to vector<1x128xf32>
    %9 = arith.mulf %7, %8 : vector<1x128xf32>
    %cst_5 = arith.constant dense<0xFF800000> : vector<128xf32>
    %10 = vector.multi_reduction <maximumf>, %1, %cst_5 [0] : vector<4x128xf32> to vector<128xf32>
    %11 = vector.shape_cast %10 : vector<128xf32> to vector<1x128xf32>
    %cst_6 = arith.constant 0.000000e+00 : f32
    %12 = vector.broadcast %cst_6 : f32 to vector<20x1xf32>
    %c0_7 = arith.constant 0 : index
    %c0_8 = arith.constant 0 : index
    %13 = vector.load %arg7[%c0_7, %c0_8] : memref<20x1xf32, #tpu.memory_space<vmem>>, vector<20x1xf32>
    tpu.vector_store %arg7[%c0_7, %c0_8], %12 {strides = array<i32>} : memref<20x1xf32, #tpu.memory_space<vmem>>, vector<20x1xf32>,
    %cst_9 = arith.constant 0.000000e+00 : f32
    %14 = vector.broadcast %cst_9 : f32 to vector<20x1xf32>
    %c0_10 = arith.constant 0 : index
    %c0_11 = arith.constant 0 : index
    %15 = vector.load %arg8[%c0_10, %c0_11] : memref<20x1xf32, #tpu.memory_space<vmem>>, vector<20x1xf32>
    tpu.vector_store %arg8[%c0_10, %c0_11], %14 {strides = array<i32>} : memref<20x1xf32, #tpu.memory_space<vmem>>, vector<20x1xf32>,
    %c8 = arith.constant 8 : index
    %c0_12 = arith.constant 0 : index
    %16 = vector.load %arg7[%c8, %c0_12] : memref<20x1xf32, #tpu.memory_space<vmem>>, vector<4x1xf32>
    tpu.vector_store %arg7[%c8, %c0_12], %3 {strides = array<i32>} : memref<20x1xf32, #tpu.memory_space<vmem>>, vector<4x1xf32>,
    %c8_13 = arith.constant 8 : index
    %c0_14 = arith.constant 0 : index
    %17 = vector.load %arg8[%c8_13, %c0_14] : memref<20x1xf32, #tpu.memory_space<vmem>>, vector<4x1xf32>
    tpu.vector_store %arg8[%c8_13, %c0_14], %5 {strides = array<i32>} : memref<20x1xf32, #tpu.memory_space<vmem>>, vector<4x1xf32>,
    %c0_15 = arith.constant 0 : index
    %18 = memref.load %arg1[%c0_15] : memref<3xf32, #tpu.memory_space<smem>>
    %c7 = arith.constant 7 : index
    %c0_16 = arith.constant 0 : index
    %19 = vector.load %arg7[%c7, %c0_16] : memref<20x1xf32, #tpu.memory_space<vmem>>, vector<4x1xf32>
    %20 = vector.broadcast %18 : f32 to vector<4x1xf32>
    %21 = arith.mulf %20, %19 : vector<4x1xf32>
    %c1 = arith.constant 1 : index
    %22 = memref.load %arg1[%c1] : memref<3xf32, #tpu.memory_space<smem>>
    %c8_17 = arith.constant 8 : index
    %c0_18 = arith.constant 0 : index
    %23 = vector.load %arg7[%c8_17, %c0_18] : memref<20x1xf32, #tpu.memory_space<vmem>>, vector<4x1xf32>
    %24 = vector.broadcast %22 : f32 to vector<4x1xf32>
    %25 = arith.mulf %24, %23 : vector<4x1xf32>
    %26 = arith.addf %21, %25 : vector<4x1xf32>
    %c2 = arith.constant 2 : index
    %27 = memref.load %arg1[%c2] : memref<3xf32, #tpu.memory_space<smem>>
    %c9 = arith.constant 9 : index
    %c0_19 = arith.constant 0 : index
    %28 = vector.load %arg7[%c9, %c0_19] : memref<20x1xf32, #tpu.memory_space<vmem>>, vector<4x1xf32>
    %29 = vector.broadcast %27 : f32 to vector<4x1xf32>
    %30 = arith.mulf %29, %28 : vector<4x1xf32>
    %31 = arith.addf %26, %30 : vector<4x1xf32>
    %cst_20 = arith.constant 7.812500e-03 : f32
    %32 = vector.broadcast %cst_20 : f32 to vector<4x1xf32>
    %33 = arith.mulf %31, %32 : vector<4x1xf32>
    %c0_21 = arith.constant 0 : index
    %34 = memref.load %arg1[%c0_21] : memref<3xf32, #tpu.memory_space<smem>>
    %c7_22 = arith.constant 7 : index
    %c0_23 = arith.constant 0 : index
    %35 = vector.load %arg8[%c7_22, %c0_23] : memref<20x1xf32, #tpu.memory_space<vmem>>, vector<4x1xf32>
    %36 = vector.broadcast %34 : f32 to vector<4x1xf32>
    %37 = arith.mulf %36, %35 : vector<4x1xf32>
    %c1_24 = arith.constant 1 : index
    %38 = memref.load %arg1[%c1_24] : memref<3xf32, #tpu.memory_space<smem>>
    %c8_25 = arith.constant 8 : index
    %c0_26 = arith.constant 0 : index
    %39 = vector.load %arg8[%c8_25, %c0_26] : memref<20x1xf32, #tpu.memory_space<vmem>>, vector<4x1xf32>
    %40 = vector.broadcast %38 : f32 to vector<4x1xf32>
    %41 = arith.mulf %40, %39 : vector<4x1xf32>
    %42 = arith.addf %37, %41 : vector<4x1xf32>
    %c2_27 = arith.constant 2 : index
    %43 = memref.load %arg1[%c2_27] : memref<3xf32, #tpu.memory_space<smem>>
    %c9_28 = arith.constant 9 : index
    %c0_29 = arith.constant 0 : index
    %44 = vector.load %arg8[%c9_28, %c0_29] : memref<20x1xf32, #tpu.memory_space<vmem>>, vector<4x1xf32>
    %45 = vector.broadcast %43 : f32 to vector<4x1xf32>
    %46 = arith.mulf %45, %44 : vector<4x1xf32>
    %47 = arith.addf %42, %46 : vector<4x1xf32>
    %c0_30 = arith.constant 0 : index
    %48 = memref.load %arg2[%c0_30] : memref<2xf32, #tpu.memory_space<smem>>
    %49 = vector.broadcast %48 : f32 to vector<4x1xf32>
    %50 = arith.mulf %49, %47 : vector<4x1xf32>
    %c1_31 = arith.constant 1 : index
    %51 = memref.load %arg2[%c1_31] : memref<2xf32, #tpu.memory_space<smem>>
    %52 = vector.broadcast %51 : f32 to vector<4x1xf32>
    %53 = arith.mulf %52, %33 : vector<4x1xf32>
    %54 = arith.addf %50, %53 : vector<4x1xf32>
    %55 = arith.negf %54 : vector<4x1xf32>
    %56 = math.exp %55 : vector<4x1xf32>
    %cst_32 = arith.constant 1.000000e+00 : f32
    %57 = vector.broadcast %cst_32 : f32 to vector<4x1xf32>
    %58 = arith.addf %57, %56 : vector<4x1xf32>
    %59 = arith.divf %57, %58 : vector<4x1xf32>
    %cst_33 = arith.constant 5.000000e-01 : f32
    %60 = vector.broadcast %cst_33 : f32 to vector<4x1xf32>
    %61 = arith.mulf %60, %59 : vector<4x1xf32>
    %cst_34 = arith.constant 0.000000e+00 : f32
    %62 = vector.broadcast %cst_34 : f32 to vector<1x128xf32>
    %cst_35 = arith.constant 0.000000e+00 : f32
    %63 = vector.broadcast %cst_35 : f32 to vector<1x128xf32>
    %c0_36 = arith.constant 0 : index
    %c0_37 = arith.constant 0 : index
    %64 = vector.load %arg9[%c0_36, %c0_37] : memref<1x384xf32, #tpu.memory_space<vmem>>, vector<1x128xf32>
    tpu.vector_store %arg9[%c0_36, %c0_37], %62 {strides = array<i32>} : memref<1x384xf32, #tpu.memory_space<vmem>>, vector<1x128xf32>,
    %c0_38 = arith.constant 0 : index
    %c256 = arith.constant 256 : index
    %65 = vector.load %arg9[%c0_38, %c256] : memref<1x384xf32, #tpu.memory_space<vmem>>, vector<1x128xf32>
    tpu.vector_store %arg9[%c0_38, %c256], %63 {strides = array<i32>} : memref<1x384xf32, #tpu.memory_space<vmem>>, vector<1x128xf32>,
    %c0_39 = arith.constant 0 : index
    %c128 = arith.constant 128 : index
    %66 = vector.load %arg9[%c0_39, %c128] : memref<1x384xf32, #tpu.memory_space<vmem>>, vector<1x128xf32>
    tpu.vector_store %arg9[%c0_39, %c128], %9 {strides = array<i32>} : memref<1x384xf32, #tpu.memory_space<vmem>>, vector<1x128xf32>,
    %c0_40 = arith.constant 0 : index
    %c0_41 = arith.constant 0 : index
    %67 = vector.load %arg10[%c0_40, %c0_41] : memref<1x384xf32, #tpu.memory_space<vmem>>, vector<1x128xf32>
    tpu.vector_store %arg10[%c0_40, %c0_41], %62 {strides = array<i32>} : memref<1x384xf32, #tpu.memory_space<vmem>>, vector<1x128xf32>,
    %c0_42 = arith.constant 0 : index
    %c256_43 = arith.constant 256 : index
    %68 = vector.load %arg10[%c0_42, %c256_43] : memref<1x384xf32, #tpu.memory_space<vmem>>, vector<1x128xf32>
    tpu.vector_store %arg10[%c0_42, %c256_43], %63 {strides = array<i32>} : memref<1x384xf32, #tpu.memory_space<vmem>>, vector<1x128xf32>,
    %c0_44 = arith.constant 0 : index
    %c128_45 = arith.constant 128 : index
    %69 = vector.load %arg10[%c0_44, %c128_45] : memref<1x384xf32, #tpu.memory_space<vmem>>, vector<1x128xf32>
    tpu.vector_store %arg10[%c0_44, %c128_45], %11 {strides = array<i32>} : memref<1x384xf32, #tpu.memory_space<vmem>>, vector<1x128xf32>,
    %70 = tpu.iota {dimensions = array<i32: 1>} : vector<1x128xi32>
    %c16_i32 = arith.constant 16 : i32
    %c0_i32 = arith.constant 0 : i32
    %71 = arith.cmpi eq, %c16_i32, %c0_i32 : i32
    %c1_i32 = arith.constant 1 : i32
    %72 = arith.select %71, %c1_i32, %c16_i32 : i32
    %73 = vector.broadcast %72 : i32 to vector<1x128xi32>
    %74 = arith.remsi %70, %73 : vector<1x128xi32>
    %c0_i32_46 = arith.constant 0 : i32
    %75 = vector.broadcast %c0_i32_46 : i32 to vector<1x128xi32>
    %76 = arith.cmpi ne, %74, %75 : vector<1x128xi32>
    %c0_i32_47 = arith.constant 0 : i32
    %77 = vector.broadcast %c0_i32_47 : i32 to vector<1x128xi32>
    %78 = arith.cmpi slt, %74, %77 : vector<1x128xi32>
    %c0_i32_48 = arith.constant 0 : i32
    %79 = arith.cmpi slt, %72, %c0_i32_48 : i32
    %80 = vector.broadcast %79 : i1 to vector<1x128xi1>
    %81 = vector.broadcast %80 : vector<1x128xi1> to vector<1x128xi1>
    %82 = arith.xori %78, %81 : vector<1x128xi1>
    %83 = arith.andi %82, %76 : vector<1x128xi1>
    %84 = vector.broadcast %72 : i32 to vector<1x128xi32>
    %85 = arith.addi %74, %84 : vector<1x128xi32>
    %86 = arith.select %83, %85, %74 : vector<1x128xi1>, vector<1x128xi32>
    %cst_49 = arith.constant 0.000000e+00 : f32
    %87 = vector.broadcast %cst_49 : f32 to vector<1x128xf32>
    %c0_50 = arith.constant 0 : index
    %88 = memref.load %arg4[%c0_50] : memref<1xf32, #tpu.memory_space<smem>>
    %89 = vector.broadcast %88 : f32 to vector<1x128xf32>
    %90 = arith.addf %87, %89 : vector<1x128xf32>
    %c0_51 = arith.constant 0 : index
    %c111 = arith.constant 111 : index
    %91 = vector.load %arg9[%c0_51, %c111] : memref<1x384xf32, #tpu.memory_space<vmem>>, vector<1x128xf32>
    %c1_i32_52 = arith.constant 1 : i32
    %92 = vector.broadcast %c1_i32_52 : i32 to vector<1x128xi32>
    %93 = arith.cmpi sge, %86, %92 : vector<1x128xi32>
    %cst_53 = arith.constant 0.000000e+00 : f32
    %94 = vector.broadcast %cst_53 : f32 to vector<1x128xf32>
    %95 = arith.select %93, %91, %94 : vector<1x128xi1>, vector<1x128xf32>
    %c0_54 = arith.constant 0 : index
    %96 = memref.load %arg3[%c0_54] : memref<18xf32, #tpu.memory_space<smem>>
    %97 = vector.broadcast %96 : f32 to vector<1x128xf32>
    %98 = arith.mulf %97, %95 : vector<1x128xf32>
    %99 = arith.addf %90, %98 : vector<1x128xf32>
    %c0_55 = arith.constant 0 : index
    %c112 = arith.constant 112 : index
    %100 = vector.load %arg9[%c0_55, %c112] : memref<1x384xf32, #tpu.memory_space<vmem>>, vector<1x128xf32>
    %c1_56 = arith.constant 1 : index
    %101 = memref.load %arg3[%c1_56] : memref<18xf32, #tpu.memory_space<smem>>
    %102 = vector.broadcast %101 : f32 to vector<1x128xf32>
    %103 = arith.mulf %102, %100 : vector<1x128xf32>
    %104 = arith.addf %99, %103 : vector<1x128xf32>
    %c0_57 = arith.constant 0 : index
    %c113 = arith.constant 113 : index
    %105 = vector.load %arg9[%c0_57, %c113] : memref<1x384xf32, #tpu.memory_space<vmem>>, vector<1x128xf32>
    %c15_i32 = arith.constant 15 : i32
    %106 = vector.broadcast %c15_i32 : i32 to vector<1x128xi32>
    %107 = arith.cmpi slt, %86, %106 : vector<1x128xi32>
    %cst_58 = arith.constant 0.000000e+00 : f32
    %108 = vector.broadcast %cst_58 : f32 to vector<1x128xf32>
    %109 = arith.select %107, %105, %108 : vector<1x128xi1>, vector<1x128xf32>
    %c2_59 = arith.constant 2 : index
    %110 = memref.load %arg3[%c2_59] : memref<18xf32, #tpu.memory_space<smem>>
    %111 = vector.broadcast %110 : f32 to vector<1x128xf32>
    %112 = arith.mulf %111, %109 : vector<1x128xf32>
    %113 = arith.addf %104, %112 : vector<1x128xf32>
    %c0_60 = arith.constant 0 : index
    %c127 = arith.constant 127 : index
    %114 = vector.load %arg9[%c0_60, %c127] : memref<1x384xf32, #tpu.memory_space<vmem>>, vector<1x128xf32>
    %c1_i32_61 = arith.constant 1 : i32
    %115 = vector.broadcast %c1_i32_61 : i32 to vector<1x128xi32>
    %116 = arith.cmpi sge, %86, %115 : vector<1x128xi32>
    %cst_62 = arith.constant 0.000000e+00 : f32
    %117 = vector.broadcast %cst_62 : f32 to vector<1x128xf32>
    %118 = arith.select %116, %114, %117 : vector<1x128xi1>, vector<1x128xf32>
    %c3 = arith.constant 3 : index
    %119 = memref.load %arg3[%c3] : memref<18xf32, #tpu.memory_space<smem>>
    %120 = vector.broadcast %119 : f32 to vector<1x128xf32>
    %121 = arith.mulf %120, %118 : vector<1x128xf32>
    %122 = arith.addf %113, %121 : vector<1x128xf32>
    %c0_63 = arith.constant 0 : index
    %c128_64 = arith.constant 128 : index
    %123 = vector.load %arg9[%c0_63, %c128_64] : memref<1x384xf32, #tpu.memory_space<vmem>>, vector<1x128xf32>
    %c4 = arith.constant 4 : index
    %124 = memref.load %arg3[%c4] : memref<18xf32, #tpu.memory_space<smem>>
    %125 = vector.broadcast %124 : f32 to vector<1x128xf32>
    %126 = arith.mulf %125, %123 : vector<1x128xf32>
    %127 = arith.addf %122, %126 : vector<1x128xf32>
    %c0_65 = arith.constant 0 : index
    %c129 = arith.constant 129 : index
    %128 = vector.load %arg9[%c0_65, %c129] : memref<1x384xf32, #tpu.memory_space<vmem>>, vector<1x128xf32>
    %c15_i32_66 = arith.constant 15 : i32
    %129 = vector.broadcast %c15_i32_66 : i32 to vector<1x128xi32>
    %130 = arith.cmpi slt, %86, %129 : vector<1x128xi32>
    %cst_67 = arith.constant 0.000000e+00 : f32
    %131 = vector.broadcast %cst_67 : f32 to vector<1x128xf32>
    %132 = arith.select %130, %128, %131 : vector<1x128xi1>, vector<1x128xf32>
    %c5 = arith.constant 5 : index
    %133 = memref.load %arg3[%c5] : memref<18xf32, #tpu.memory_space<smem>>
    %134 = vector.broadcast %133 : f32 to vector<1x128xf32>
    %135 = arith.mulf %134, %132 : vector<1x128xf32>
    %136 = arith.addf %127, %135 : vector<1x128xf32>
    %c0_68 = arith.constant 0 : index
    %c143 = arith.constant 143 : index
    %137 = vector.load %arg9[%c0_68, %c143] : memref<1x384xf32, #tpu.memory_space<vmem>>, vector<1x128xf32>
    %c1_i32_69 = arith.constant 1 : i32
    %138 = vector.broadcast %c1_i32_69 : i32 to vector<1x128xi32>
    %139 = arith.cmpi sge, %86, %138 : vector<1x128xi32>
    %cst_70 = arith.constant 0.000000e+00 : f32
    %140 = vector.broadcast %cst_70 : f32 to vector<1x128xf32>
    %141 = arith.select %139, %137, %140 : vector<1x128xi1>, vector<1x128xf32>
    %c6 = arith.constant 6 : index
    %142 = memref.load %arg3[%c6] : memref<18xf32, #tpu.memory_space<smem>>
    %143 = vector.broadcast %142 : f32 to vector<1x128xf32>
    %144 = arith.mulf %143, %141 : vector<1x128xf32>
    %145 = arith.addf %136, %144 : vector<1x128xf32>
    %c0_71 = arith.constant 0 : index
    %c144 = arith.constant 144 : index
    %146 = vector.load %arg9[%c0_71, %c144] : memref<1x384xf32, #tpu.memory_space<vmem>>, vector<1x128xf32>
    %c7_72 = arith.constant 7 : index
    %147 = memref.load %arg3[%c7_72] : memref<18xf32, #tpu.memory_space<smem>>
    %148 = vector.broadcast %147 : f32 to vector<1x128xf32>
    %149 = arith.mulf %148, %146 : vector<1x128xf32>
    %150 = arith.addf %145, %149 : vector<1x128xf32>
    %c0_73 = arith.constant 0 : index
    %c145 = arith.constant 145 : index
    %151 = vector.load %arg9[%c0_73, %c145] : memref<1x384xf32, #tpu.memory_space<vmem>>, vector<1x128xf32>
    %c15_i32_74 = arith.constant 15 : i32
    %152 = vector.broadcast %c15_i32_74 : i32 to vector<1x128xi32>
    %153 = arith.cmpi slt, %86, %152 : vector<1x128xi32>
    %cst_75 = arith.constant 0.000000e+00 : f32
    %154 = vector.broadcast %cst_75 : f32 to vector<1x128xf32>
    %155 = arith.select %153, %151, %154 : vector<1x128xi1>, vector<1x128xf32>
    %c8_76 = arith.constant 8 : index
    %156 = memref.load %arg3[%c8_76] : memref<18xf32, #tpu.memory_space<smem>>
    %157 = vector.broadcast %156 : f32 to vector<1x128xf32>
    %158 = arith.mulf %157, %155 : vector<1x128xf32>
    %159 = arith.addf %150, %158 : vector<1x128xf32>
    %c0_77 = arith.constant 0 : index
    %c111_78 = arith.constant 111 : index
    %160 = vector.load %arg10[%c0_77, %c111_78] : memref<1x384xf32, #tpu.memory_space<vmem>>, vector<1x128xf32>
    %c1_i32_79 = arith.constant 1 : i32
    %161 = vector.broadcast %c1_i32_79 : i32 to vector<1x128xi32>
    %162 = arith.cmpi sge, %86, %161 : vector<1x128xi32>
    %cst_80 = arith.constant 0.000000e+00 : f32
    %163 = vector.broadcast %cst_80 : f32 to vector<1x128xf32>
    %164 = arith.select %162, %160, %163 : vector<1x128xi1>, vector<1x128xf32>
    %c9_81 = arith.constant 9 : index
    %165 = memref.load %arg3[%c9_81] : memref<18xf32, #tpu.memory_space<smem>>
    %166 = vector.broadcast %165 : f32 to vector<1x128xf32>
    %167 = arith.mulf %166, %164 : vector<1x128xf32>
    %168 = arith.addf %159, %167 : vector<1x128xf32>
    %c0_82 = arith.constant 0 : index
    %c112_83 = arith.constant 112 : index
    %169 = vector.load %arg10[%c0_82, %c112_83] : memref<1x384xf32, #tpu.memory_space<vmem>>, vector<1x128xf32>
    %c10 = arith.constant 10 : index
    %170 = memref.load %arg3[%c10] : memref<18xf32, #tpu.memory_space<smem>>
    %171 = vector.broadcast %170 : f32 to vector<1x128xf32>
    %172 = arith.mulf %171, %169 : vector<1x128xf32>
    %173 = arith.addf %168, %172 : vector<1x128xf32>
    %c0_84 = arith.constant 0 : index
    %c113_85 = arith.constant 113 : index
    %174 = vector.load %arg10[%c0_84, %c113_85] : memref<1x384xf32, #tpu.memory_space<vmem>>, vector<1x128xf32>
    %c15_i32_86 = arith.constant 15 : i32
    %175 = vector.broadcast %c15_i32_86 : i32 to vector<1x128xi32>
    %176 = arith.cmpi slt, %86, %175 : vector<1x128xi32>
    %cst_87 = arith.constant 0.000000e+00 : f32
    %177 = vector.broadcast %cst_87 : f32 to vector<1x128xf32>
    %178 = arith.select %176, %174, %177 : vector<1x128xi1>, vector<1x128xf32>
    %c11 = arith.constant 11 : index
    %179 = memref.load %arg3[%c11] : memref<18xf32, #tpu.memory_space<smem>>
    %180 = vector.broadcast %179 : f32 to vector<1x128xf32>
    %181 = arith.mulf %180, %178 : vector<1x128xf32>
    %182 = arith.addf %173, %181 : vector<1x128xf32>
    %c0_88 = arith.constant 0 : index
    %c127_89 = arith.constant 127 : index
    %183 = vector.load %arg10[%c0_88, %c127_89] : memref<1x384xf32, #tpu.memory_space<vmem>>, vector<1x128xf32>
    %c1_i32_90 = arith.constant 1 : i32
    %184 = vector.broadcast %c1_i32_90 : i32 to vector<1x128xi32>
    %185 = arith.cmpi sge, %86, %184 : vector<1x128xi32>
    %cst_91 = arith.constant 0.000000e+00 : f32
    %186 = vector.broadcast %cst_91 : f32 to vector<1x128xf32>
    %187 = arith.select %185, %183, %186 : vector<1x128xi1>, vector<1x128xf32>
    %c12 = arith.constant 12 : index
    %188 = memref.load %arg3[%c12] : memref<18xf32, #tpu.memory_space<smem>>
    %189 = vector.broadcast %188 : f32 to vector<1x128xf32>
    %190 = arith.mulf %189, %187 : vector<1x128xf32>
    %191 = arith.addf %182, %190 : vector<1x128xf32>
    %c0_92 = arith.constant 0 : index
    %c128_93 = arith.constant 128 : index
    %192 = vector.load %arg10[%c0_92, %c128_93] : memref<1x384xf32, #tpu.memory_space<vmem>>, vector<1x128xf32>
    %c13 = arith.constant 13 : index
    %193 = memref.load %arg3[%c13] : memref<18xf32, #tpu.memory_space<smem>>
    %194 = vector.broadcast %193 : f32 to vector<1x128xf32>
    %195 = arith.mulf %194, %192 : vector<1x128xf32>
    %196 = arith.addf %191, %195 : vector<1x128xf32>
    %c0_94 = arith.constant 0 : index
    %c129_95 = arith.constant 129 : index
    %197 = vector.load %arg10[%c0_94, %c129_95] : memref<1x384xf32, #tpu.memory_space<vmem>>, vector<1x128xf32>
    %c15_i32_96 = arith.constant 15 : i32
    %198 = vector.broadcast %c15_i32_96 : i32 to vector<1x128xi32>
    %199 = arith.cmpi slt, %86, %198 : vector<1x128xi32>
    %cst_97 = arith.constant 0.000000e+00 : f32
    %200 = vector.broadcast %cst_97 : f32 to vector<1x128xf32>
    %201 = arith.select %199, %197, %200 : vector<1x128xi1>, vector<1x128xf32>
    %c14 = arith.constant 14 : index
    %202 = memref.load %arg3[%c14] : memref<18xf32, #tpu.memory_space<smem>>
    %203 = vector.broadcast %202 : f32 to vector<1x128xf32>
    %204 = arith.mulf %203, %201 : vector<1x128xf32>
    %205 = arith.addf %196, %204 : vector<1x128xf32>
    %c0_98 = arith.constant 0 : index
    %c143_99 = arith.constant 143 : index
    %206 = vector.load %arg10[%c0_98, %c143_99] : memref<1x384xf32, #tpu.memory_space<vmem>>, vector<1x128xf32>
    %c1_i32_100 = arith.constant 1 : i32
    %207 = vector.broadcast %c1_i32_100 : i32 to vector<1x128xi32>
    %208 = arith.cmpi sge, %86, %207 : vector<1x128xi32>
    %cst_101 = arith.constant 0.000000e+00 : f32
    %209 = vector.broadcast %cst_101 : f32 to vector<1x128xf32>
    %210 = arith.select %208, %206, %209 : vector<1x128xi1>, vector<1x128xf32>
    %c15 = arith.constant 15 : index
    %211 = memref.load %arg3[%c15] : memref<18xf32, #tpu.memory_space<smem>>
    %212 = vector.broadcast %211 : f32 to vector<1x128xf32>
    %213 = arith.mulf %212, %210 : vector<1x128xf32>
    %214 = arith.addf %205, %213 : vector<1x128xf32>
    %c0_102 = arith.constant 0 : index
    %c144_103 = arith.constant 144 : index
    %215 = vector.load %arg10[%c0_102, %c144_103] : memref<1x384xf32, #tpu.memory_space<vmem>>, vector<1x128xf32>
    %c16 = arith.constant 16 : index
    %216 = memref.load %arg3[%c16] : memref<18xf32, #tpu.memory_space<smem>>
    %217 = vector.broadcast %216 : f32 to vector<1x128xf32>
    %218 = arith.mulf %217, %215 : vector<1x128xf32>
    %219 = arith.addf %214, %218 : vector<1x128xf32>
    %c0_104 = arith.constant 0 : index
    %c145_105 = arith.constant 145 : index
    %220 = vector.load %arg10[%c0_104, %c145_105] : memref<1x384xf32, #tpu.memory_space<vmem>>, vector<1x128xf32>
    %c15_i32_106 = arith.constant 15 : i32
    %221 = vector.broadcast %c15_i32_106 : i32 to vector<1x128xi32>
    %222 = arith.cmpi slt, %86, %221 : vector<1x128xi32>
    %cst_107 = arith.constant 0.000000e+00 : f32
    %223 = vector.broadcast %cst_107 : f32 to vector<1x128xf32>
    %224 = arith.select %222, %220, %223 : vector<1x128xi1>, vector<1x128xf32>
    %c17 = arith.constant 17 : index
    %225 = memref.load %arg3[%c17] : memref<18xf32, #tpu.memory_space<smem>>
    %226 = vector.broadcast %225 : f32 to vector<1x128xf32>
    %227 = arith.mulf %226, %224 : vector<1x128xf32>
    %228 = arith.addf %219, %227 : vector<1x128xf32>
    %229 = arith.negf %228 : vector<1x128xf32>
    %230 = math.exp %229 : vector<1x128xf32>
    %cst_108 = arith.constant 1.000000e+00 : f32
    %231 = vector.broadcast %cst_108 : f32 to vector<1x128xf32>
    %232 = arith.addf %231, %230 : vector<1x128xf32>
    %233 = arith.divf %231, %232 : vector<1x128xf32>
    %cst_109 = arith.constant 5.000000e-01 : f32
    %234 = vector.broadcast %cst_109 : f32 to vector<1x128xf32>
    %235 = arith.mulf %234, %233 : vector<1x128xf32>
    %236 = vector.broadcast %61 : vector<4x1xf32> to vector<4x128xf32>
    %237 = vector.broadcast %235 : vector<1x128xf32> to vector<4x128xf32>
    %238 = arith.addf %236, %237 : vector<4x128xf32>
    %239 = arith.mulf %1, %238 : vector<4x128xf32>
    %c0_110 = arith.constant 0 : index
    %c0_111 = arith.constant 0 : index
    %c0_112 = arith.constant 0 : index
    %240 = vector.load %arg6[%c0_110, %c0_111, %c0_112] : memref<1x4x128xf32, #tpu.memory_space<vmem>>, vector<1x4x128xf32>
    %241 = vector.shape_cast %240 : vector<1x4x128xf32> to vector<4x128xf32>
    %242 = vector.shape_cast %239 : vector<4x128xf32> to vector<1x4x128xf32>
    tpu.vector_store %arg6[%c0_110, %c0_111, %c0_112], %242 {strides = array<i32>} : memref<1x4x128xf32, #tpu.memory_space<vmem>>, vector<1x4x128xf32>,
    return
  }
  func.func @transform_0(%arg0: i32) -> i32 {
    %c0_i32 = arith.constant 0 : i32
    %c0_i32_0 = arith.constant 0 : i32
    return %c0_i32 : i32
  }
  func.func @transform_1(%arg0: i32) -> i32 {
    %c0_i32 = arith.constant 0 : i32
    %c0_i32_0 = arith.constant 0 : i32
    return %c0_i32 : i32
  }
  func.func @transform_2(%arg0: i32) -> i32 {
    %c0_i32 = arith.constant 0 : i32
    %c0_i32_0 = arith.constant 0 : i32
    return %c0_i32 : i32
  }
  func.func @transform_3(%arg0: i32) -> i32 {
    %c0_i32 = arith.constant 0 : i32
    %c0_i32_0 = arith.constant 0 : i32
    return %c0_i32 : i32
  }
  func.func @transform_4(%arg0: i32) -> (i32, i32, i32) {
    %c0_i32 = arith.constant 0 : i32
    %c0_i32_0 = arith.constant 0 : i32
    %c0_i32_1 = arith.constant 0 : i32
    return %arg0, %c0_i32, %c0_i32_0 : i32, i32, i32
  }
  func.func @transform_5(%arg0: i32) -> (i32, i32, i32) {
    %c0_i32 = arith.constant 0 : i32
    %c0_i32_0 = arith.constant 0 : i32
    %c0_i32_1 = arith.constant 0 : i32
    return %arg0, %c0_i32, %c0_i32_0 : i32, i32, i32
  }
}

</mosaic_0001>

<bundles_post_ra>
// kernel: tpu_custom_call.1
= control target key start
LH: loop header
LB: loop body
LE: loop exit
PB: predicated region body
PF: predicated region fallthrough
CT: control target
= control target key end

     0   :  { %s1451_s0 = inlined_call_operand.vmem [shape: f32[3], index: 0, kind: input, shape index: {}]   ;;  %s1452_s1 = inlined_call_operand.vmem [shape: f32[2], index: 1, kind: input, shape index: {}]   ;;  %s1453_s2 = inlined_call_operand.vmem [shape: f32[18], index: 2, kind: input, shape index: {}]   ;;  %s1454_s3 = inlined_call_operand.<no memory space> [shape: f32[1], index: 3, kind: input, shape index: {}]   ;;  %s1455_s4 = inlined_call_operand.hbm [shape: f32[4,4,128], index: 4, kind: input, shape index: {}]   ;;  %s1456_s5 = inlined_call_operand.hbm [shape: f32[4,4,128], index: 5, kind: output, shape index: {}]  }
   0x1   :  { %10 = sst [smem:[#allocation6]] %s1454_s3 }
   0x2   :  { %11 = vsyncpa [#allocation10], 0 }
   0x3   :  { %12 = vsyncpa [#allocation12], 0 }
   0x4   :  { %13 = vsyncpa [#allocation8], 0 }
   0x5   :  { %15 = vsyncpa [#allocation8 + $0x1], 0 }
   0x6   :  { %16 = vsyncpa [#allocation9], 0 }
   0x7   :  { %18 = vsyncpa [#allocation9 + $0x1], 0  ;;  %s1112_s20 = smov 0   ;;  %s1114_s21 = smov 0  }
   0x8   :  { %s1116_s22 = smov 0   ;;  %s1118_s23 = smov 0  }
   0x9 LB: > { %s1133_s3 = sadd.s32 4294967295, %s1062_s23   ;;  %s776_s24 = sadd.s32 4294967294, %s1062_s23   ;;  %s1062_s23 = sphi %s1118_s23, %s1483_s23   ;;  %s1058_s22 = sphi %s1116_s22, %s1482_s22   ;;  %s1054_s21 = sphi %s1114_s21, %s1481_s21   ;;  %s1050_s20 = sphi %s1112_s20, %s1480_s20  }
   0xa   : > { %p128_p0 = scmp.ne.s32.totalorder %s1054_s21, %s1050_s20  ;;  %p1457_p1 = scmp.eq.s32.totalorder %s1133_s3, 0 }
   0xb   : > { %p158_p3 = scmp.eq.s32.totalorder %s776_s24, 3  ;;  %p777_p5 = scmp.ge.s32.totalorder %s1062_s23, 1 }
   0xc   : > { %p1142_p4 = por %p1457_p1, %p128_p0  ;;  %p165_p7 = scmp.lt.s32.totalorder %s1062_s23, 5 }
   0xd   : > { %p1147_p6 = por %p158_p3, %p128_p0  ;;  %s189_s29 = sshll.u32 %s1452_s1, 4  ;;  %s190_s29 = int_to_ptr.vmem [resolvable:$true] %s189_s29 }
   0xe   : > { %s1460_s25 = scalar_select %p1142_p4, 1, 0 }
   0xf   : > { %s1461_s26 = scalar_select %p1147_p6, 1, 0 }
  0x10   : > { %p1155_p8 = pnand %p777_p5, %p165_p7  ;;  %s178_s8 = sshll.u32 %s1451_s0, 4  ;;  %s179_s8 = int_to_ptr.vmem [resolvable:$true] %s178_s8 }
  0x11   : > { %s200_s12 = sshll.u32 %s1453_s2, 4  ;;  %s913_s13 = scalar_lea.vmem %s190_s29, 16  ;;  %s1173_s12 = int_to_ptr.vmem [resolvable:$true] %s200_s12 }
  0x12   : > { %s1462_s30 = scalar_select %p1155_p8, 1, 0 }
  0x13   : > { %p832_p9 = pneg %p1155_p8  ;;  %p914_p11 = scmp.ne.s32.totalorder %s190_s29, %s913_s13 }
  0x14   : > { %p921_p3 = scmp.lt.s32.totalorder %s190_s29, %s190_s29  ;;  %p922_p5 = scmp.lt.s32.totalorder %s913_s13, %s913_s13 }
  0x15   : > { %p1166_p10 = pnand %p832_p9, %p1457_p1 }
  0x16   : > { %p923_p7 = por %p922_p5, %p921_p3 }
  0x17   : > { %p915_p12 = pneg %p1166_p10 }
  0x19   : > { %p916_p13 = pnand %p915_p12, %p914_p11 }
  0x1b   : > { %p917_p0 = pneg %p916_p13 }
  0x1d   : > { %p924_p9 = pnand %p923_p7, %p917_p0 }
  0x1f   : > { %927 = shalt.err (!%p924_p9)
}
  0x20   : > { %s1064_s14 = smov [#allocation11]   ;;  %s928_s15 = scalar_lea.vmem %s179_s8, 16 }
  0x21   : > { %838 = dma.vmem_to_smem (!%p1166_p10), %s190_s29, 16, %s1064_s14, [#allocation12]  }
  0x22   : > { %p929_p1 = scmp.ne.s32.totalorder %s179_s8, %s928_s15  ;;  %p936_p4 = scmp.lt.s32.totalorder %s179_s8, %s179_s8 }
  0x23   : > { %p937_p8 = scmp.lt.s32.totalorder %s928_s15, %s928_s15 }
  0x24   : > { %p931_p2 = pnand %p929_p1, %p915_p12 }
  0x25   : > { %p938_p11 = por %p937_p8, %p936_p4 }
  0x26   : > { %p932_p6 = pneg %p931_p2 }
  0x28   : > { %p939_p13 = pnand %p938_p11, %p932_p6 }
  0x2a   : > { %942 = shalt.err (!%p939_p13)
}
  0x2b   : > { %s1065_s16 = smov [#allocation7]   ;;  %s943_s17 = scalar_lea.vmem %s1173_s12, 16 }
  0x2c   : > { %835 = dma.vmem_to_smem (!%p1166_p10), %s179_s8, 16, %s1065_s16, [#allocation10]  }
  0x2d   : > { %p944_p0 = scmp.ne.s32.totalorder %s1173_s12, %s943_s17  ;;  %p951_p2 = scmp.lt.s32.totalorder %s1173_s12, %s1173_s12 }
  0x2e   : > { %p952_p5 = scmp.lt.s32.totalorder %s943_s17, %s943_s17 }
  0x2f   : > { %p946_p3 = pnand %p944_p0, %p915_p12 }
  0x30   : > { %p953_p4 = por %p952_p5, %p951_p2 }
  0x31   : > { %p947_p1 = pneg %p946_p3 }
  0x33   : > { %p954_p6 = pnand %p953_p4, %p947_p1 }
  0x35   : > { %957 = shalt.err (!%p954_p6)
}
  0x36   : > { %s1066_s18 = smov [#allocation13]   ;;  %s1198_s19 = sadd.s32 1, %s1062_s23  }
  0x37   : > { %841 = dma.vmem_to_smem (!%p1166_p10), %s1173_s12, 16, %s1066_s18, [#allocation12]  }
  0x38   : > { %s112_s24 = ssub.s32 %s1062_s23, %s1198_s19  ;;  %s115_s27 = sadd.s32 1, %s1058_s22 }
  0x39   : > { %p113_p8 = scmp.eq.s32.totalorder %s112_s24, 0  ;;  %p122_p12 = scmp.ne.s32.totalorder %s1058_s22, %s1054_s21 }
  0x3a   : > { %p123_p7 = scmp.eq.s32.totalorder %s1062_s23, 0  ;;  %p853_p9 = scmp.lt.s32.totalorder %s1062_s23, 4 }
  0x3b   : > { %s1208_s28 = scalar_select %p113_p8, %s1058_s22, %s115_s27  }
  0x3c   : > { %p124_p11 = por %p123_p7, %p122_p12  ;;  %p1464_p13 = scmp.eq.s32.totalorder %s1133_s3, 3 }
  0x3d   : > { %s214_s6 = sand.u32 1, %s1058_s22   ;;  %s783_s7 = sshll.u32 %s1062_s23, 6 }
  0x3e   : > { %p1212_p0 = por %p1464_p13, %p122_p12  ;;  %s782_s8 = sshll.u32 %s214_s6, 2 }
  0x3f   : > { %s1221_s11 = scalar_lea.hbm %s1455_s4, %s783_s7  ;;  %s218_s12 = scalar_lea.vmem [#allocation14], %s782_s8 }
  0x40   : > { %s225_s13 = sshll.u32 %s218_s12, 4  ;;  %p1223_p10 = pnand %p853_p9, %p124_p11  ;;  %s1227_s13 = int_to_ptr.vmem [resolvable:$true] %s225_s13 }
  0x41   : > { %s215_s15 = scalar_lea.sflag [#allocation8], %s214_s6  ;;  %s958_s16 = scalar_lea.hbm %s1221_s11, 64 }
  0x42   : > { %p959_p3 = scmp.ne.s32.totalorder %s1221_s11, %s958_s16  ;;  %p960_p1 = pneg %p1223_p10 }
  0x43   : > { %s963_s24 = scalar_lea.hbm %s1455_s4, 256  ;;  %p964_p4 = scmp.lt.u32.totalorder %s1221_s11, %s1455_s4 }
  0x44   : > { %p961_p2 = pnand %p960_p1, %p959_p3  ;;  %p965_p6 = scmp.lt.u32.totalorder %s963_s24, %s958_s16 }
  0x45   : > { %p967_p12 = scmp.lt.u32.totalorder %s958_s16, %s1221_s11 }
  0x46   : > { %p962_p5 = pneg %p961_p2  ;;  %p966_p8 = por %p965_p6, %p964_p4 }
  0x48   : > { %p968_p7 = por %p967_p12, %p966_p8 }
  0x4a   : > { %p969_p9 = pnand %p968_p7, %p962_p5 }
  0x4c   : > { %972 = shalt.err (!%p969_p9)
}
  0x4d   : > { %s973_s6 = scalar_lea.vmem %s1227_s13, 64  ;;  %s1067_s8 = smov [#allocation14]  }
  0x4e   : > { %p974_p11 = scmp.ne.s32.totalorder %s1227_s13, %s973_s6  ;;  %s978_s9 = sshll.u32 %s1067_s8, 4  ;;  %s979_s9 = int_to_ptr.vmem [resolvable:$false] %s978_s9 }
  0x4f   : > { %s980_s10 = scalar_lea.vmem %s979_s9, 128  ;;  %p981_p2 = scmp.lt.s32.totalorder %s1227_s13, %s979_s9 }
  0x50   : > { %p976_p13 = pnand %p974_p11, %p960_p1  ;;  %p982_p4 = scmp.lt.s32.totalorder %s980_s10, %s973_s6 }
  0x52   : > { %p977_p3 = pneg %p976_p13  ;;  %p983_p6 = por %p982_p4, %p981_p2 }
  0x54   : > { %p984_p8 = pnand %p983_p6, %p977_p3 }
  0x56   : > { %987 = shalt.err (!%p984_p8)
}
  0x57   : > { %845 = dma.hbm_to_vmem [thread:$0]  (!%p1223_p10), %s1221_s11, 64, %s1227_s13, %s215_s15  }
  0x58   : > { %p1467_p5 = scmp.ne.s32.totalorder %s1462_s30, 0 }
  0x59   : > { %p1468_p1 = scmp.eq.s32.totalorder (!%p1467_p5), %s1133_s3, 0 }
  0x5a   : > { %234 = sbr.rel (%p1467_p5) target bundleno = 448 (0x1c0), region = 40 }
  0x61   : > { %1033 = dma.done.wait (%p1468_p1), [#allocation10], 16   ;;  %p1469_p12 = pmov %p1468_p1 }
  0x62   : > { %p1470_p7 = pmov %p1468_p1 }
  0x63   : > { %1035 = vsyncadd (%p1469_p12), [#allocation10], 4294967280 }
  0x64   : > { %1037 = dma.done.wait (%p1470_p7), [#allocation12], 32   ;;  %p1471_p9 = pmov %p1468_p1 }
  0x65   : > { %s1265_s12 = sand.u32 1, %s1054_s21   ;;  %p1472_p10 = scmp.ne.s32.totalorder %s1460_s25, 0 }
  0x66   : > { %1039 = vsyncadd (%p1471_p9), [#allocation12], 4294967264  ;;  %s788_s30 = sshll.u32 %s1265_s12, 2  ;;  %s249_s11 = scalar_lea.sflag [#allocation8], %s1265_s12 }
  0x67   : > { %s252_s13 = scalar_lea.vmem [#allocation14], %s788_s30 }
  0x68   : > { %1041 = dma.done.wait (%p1472_p10), %s249_s11, 64  }
  0x69   : > { %1043 = vsyncadd (%p1472_p10), %s249_s11, 4294967232 }
  0x6a   : > { %257 = sfence }
  0x6b   : > { %v1275_v0 = vld [vmem:[%s252_s13] sm:$0xf]  ;;  %vm281_vm0 = vcmask 1043456   ;;  %v348_v1 = vlaneseq  ;;  %vm301_vm1 = vcmask 7168   ;;  %vm304_vm2 = vcmask 3072   ;;  %s800_s25 = sld [smem:[#allocation13 + $0x7]] }
  0x6c   : > { %v282_v2 = vsel %vm281_vm0, %v1275_v0, 0.0  ;;  %v285_v3 = vsel %vm281_vm0, %v1275_v0, -inf  ;;  %v1068_v7 = vmov 0.0   ;;  %s1069_s14 = smov 17   ;;  %s1070_s15 = smov 15   ;;  %v1071_v27 = vmov 0  }
  0x6d   : > { %vm1280_vm3 = vcmp.lt.s32.totalorder %v348_v1, 128  ;;  %283 = vadd.xlane.f32.xlu0 %v282_v2  ;;  %v288_v5 = vrot.slane %v282_v2, 4  ;;  %v295_v6 = vrot.slane %v285_v3, 4  ;;  %302 = vst.msk [vmem:[#allocation2] sm:$0xff] %vm301_vm1, %v1068_v7  ;;  %303 = vst.msk [vmem:[#allocation2 + $0x8] sm:$0xff] %vm301_vm1, %v1068_v7  ;;  %v379_v19 = vshrl.u32 %v348_v1, 7  ;;  %903 = vset.pattern.permute.xlu1 %v1071_v27 }
  0x6e   : > { %306 = vst.msk [vmem:[#allocation3] sm:$0xff] %vm301_vm1, %v1068_v7  ;;  %307 = vst.msk [vmem:[#allocation3 + $0x8] sm:$0xff] %vm301_vm1, %v1068_v7  ;;  %904 = vset.pattern.permute.xlu0 %v1071_v27  ;;  %s794_s16 = sld [smem:[#allocation13 + $0x1]]  ;;  %s1072_s17 = smov 127   ;;  %v359_v27 = vand.u32 127, %v348_v1  ;;  %vm390_vm4 = vcmask 138240  }
  0x6f   : > { %352 = vst.msk [vmem:[#allocation4] sm:$0x1] %vm1280_vm3, %v1068_v7  ;;  %353 = vst.msk [vmem:[#allocation4 + $0x2] sm:$0x1] %vm1280_vm3, %v1068_v7  ;;  %v289_v8 = vadd.f32 %v288_v5, %v282_v2  ;;  %v296_v9 = vmax.f32 %v285_v3, %v295_v6  ;;  %v1301_v20 = vsub.s32 0, %v379_v19  ;;  %v1303_v21 = vsub.s32 1, %v379_v19 }
  0x70   : > { %355 = vst.msk [vmem:[#allocation5] sm:$0x1] %vm1280_vm3, %v1068_v7  ;;  %356 = vst.msk [vmem:[#allocation5 + $0x2] sm:$0x1] %vm1280_vm3, %v1068_v7  ;;  %s1073_s18 = smov 113   ;;  %s803_s24 = sld [smem:[#allocation13 + $0xa]] }
  0x71   : > { %v290_v10 = vrot.slane %v289_v8, 2  ;;  %v297_v11 = vrot.slane %v296_v9, 2  ;;  %286 = vmax.xlane.f32.xlu0 %v285_v3  ;;  %v482_v28 = vstv %s800_s25  ;;  %s1074_s27 = smov 1   ;;  %s1075_s7 = smov 111   ;;  %vm423_vm6 = vcmask 121856  }
  0x72   : > { %s1076_s6 = smov 112   ;;  %s1077_s8 = smov 16   ;;  %vm414_vm8 = vcmask 130048   ;;  %vm461_vm9 = vcmask 1039360   ;;  %vm473_vm10 = vcmask 924672   ;;  %vm505_vm11 = vcmask 908288  }
  0x73   : > { %v291_v12 = vadd.f32 %v290_v10, %v289_v8  ;;  %v298_v13 = vmax.f32 %v296_v9, %v297_v11  ;;  %s809_s9 = sld [smem:[#allocation13 + $0x10]]  ;;  %s790_s11 = sld [smem:[#allocation7 + $0x1]]  ;;  %vm497_vm12 = vcmask 916480  }
  0x74   : > { %v399_v30 = vstv %s794_s16  ;;  %s311_s10 = sld [smem:[#allocation7]]  ;;  %s791_s13 = sld [smem:[#allocation7 + $0x2]] }
  0x75   : > { %v292_v14 = vrot.slane %v291_v12, 1  ;;  %v299_v15 = vrot.slane %v298_v13, 1  ;;  %s334_s25 = sld [smem:[#allocation11]] }
  0x76   : > { %v535_v36 = vstv %s803_s24  ;;  %s372_s16 = sld [smem:[#allocation6]]  ;;  %s797_s24 = sld [smem:[#allocation13 + $0x4]] }
  0x77   : > { %v293_v16 = vadd.f32 %v292_v14, %v291_v12  ;;  %v300_v17 = vmax.f32 %v298_v13, %v299_v15 }
  0x79   : > { %v294_v18 = vmul.f32 0.25, %v293_v16  ;;  %357 = vst.msk [vmem:[#allocation5 + $0x1] sm:$0x1] %vm1280_vm3, %v300_v17  ;;  %v613_v44 = vstv %s809_s9  ;;  %v317_v54 = vstv %s790_s11  ;;  %s804_s9 = sld [smem:[#allocation13 + $0xb]]  ;;  %s806_s11 = sld [smem:[#allocation13 + $0xd]] }
  0x7a   : > { %v313_v53 = vstv %s311_s10  ;;  %v322_v58 = vstv %s791_s13  ;;  %s805_s10 = sld [smem:[#allocation13 + $0xc]]  ;;  %s807_s13 = sld [smem:[#allocation13 + $0xe]] }
  0x7b   : > { %354 = vst.msk [vmem:[#allocation4 + $0x1] sm:$0x1] %vm1280_vm3, %v294_v18  ;;  %v335_v10 = vstv %s334_s25  ;;  %s808_s25 = sld [smem:[#allocation13 + $0xf]] }
  0x80   : > { %v513_v32 = vld [vmem:[#allocation5] sm:$0x3] }
  0x81   : > { %v522_v35 = vrot.slane %v513_v32, %v1303_v21  ;;  %v536_v38 = vmul.f32 %v535_v36, %v513_v32  ;;  %v580_v41 = vld [vmem:[#allocation5 + $0x1] sm:$0x3]  ;;  %v518_v45 = vrot.slane %v513_v32, %v1301_v20 }
  0x82   : > { %v375_v22 = vld [vmem:[#allocation4] sm:$0x3]  ;;  %v589_v42 = vrot.slane %v580_v41, %v1303_v21  ;;  %v614_v46 = vmul.f32 %v613_v44, %v580_v41  ;;  %v585_v49 = vrot.slane %v580_v41, %v1301_v20 }
  0x83   : > { %v381_v23 = vrot.slane %v375_v22, %v1301_v20  ;;  %v385_v24 = vrot.slane %v375_v22, %v1303_v21  ;;  %v447_v25 = vld [vmem:[#allocation4 + $0x1] sm:$0x3]  ;;  %v400_v34 = vmul.f32 %v399_v30, %v375_v22  ;;  %v545_v40 = vrot.slane %v536_v38, %v1303_v21 }
  0x84   : > { %v456_v26 = vrot.slane %v447_v25, %v1303_v21  ;;  %v483_v29 = vmul.f32 %v482_v28, %v447_v25  ;;  %v452_v33 = vrot.slane %v447_v25, %v1301_v20  ;;  %v623_v47 = vrot.slane %v614_v46, %v1303_v21 }
  0x85   : > { %386 = vrot.lane.b32.xlu1 %v381_v23, %s1069_s14  ;;  %v405_v37 = vrot.slane %v400_v34, %v1301_v20  ;;  %v409_v39 = vrot.slane %v400_v34, %v1303_v21  ;;  %v541_v48 = vrot.slane %v536_v38, %v1301_v20  ;;  %v619_v50 = vrot.slane %v614_v46, %v1301_v20 }
  0x86   : > { %v492_v31 = vrot.slane %v483_v29, %v1303_v21  ;;  %v488_v43 = vrot.slane %v483_v29, %v1301_v20  ;;  %v364_v29 = vand.u32 15, %v359_v27  ;;  %v373_v38 = vstv %s372_s16  ;;  %s279_s16 = scalar_lea.vmem [#allocation15], %s788_s30 }
  0x87   : > { %419 = vrot.lane.b32.xlu0 %v381_v23, %s1070_s15 }
  0x88   : > { %vm1352_vm5 = vcmp.ge.s32.totalorder %v364_v29, 1  ;;  %vm1359_vm7 = vcmp.lt.s32.totalorder %v364_v29, 15 }
  0x89   : > { %388 = vrot.lane.b32.xlu1 %v385_v24, %s1069_s14 }
  0x8b   : > { %459 = vrot.lane.b32.xlu0 %v456_v26, %s1072_s17 }
  0x8d   : > { %421 = vrot.lane.b32.xlu1 %v385_v24, %s1070_s15 }
  0x8f   : > { %471 = vrot.lane.b32.xlu0 %v456_v26, %s1073_s18 }
  0x91   : > { %431 = vrot.lane.b32.xlu1 %v381_v23, %s1074_s27 }
  0x93   : > { %503 = vrot.lane.b32.xlu0 %v456_v26, %s1075_s7 }
  0x95   : > { %433 = vrot.lane.b32.xlu1 %v385_v24, %s1074_s27 }
  0x97   : > { %495 = vrot.lane.b32.xlu0 %v492_v31, %s1076_s6 }
  0x99   : > { %457 = vrot.lane.b32.xlu1 %v452_v33, %s1072_s17 }
  0x9b   : > { %525 = vrot.lane.b32.xlu0 %v522_v35, %s1069_s14 }
  0x9d   : > { %410 = vrot.lane.b32.xlu1 %v405_v37, %s1077_s8 }
  0x9f   : > { %555 = vrot.lane.b32.xlu0 %v522_v35, %s1070_s15 }
  0xa1   : > { %412 = vrot.lane.b32.xlu1 %v409_v39, %s1077_s8 }
  0xa3   : > { %548 = vrot.lane.b32.xlu0 %v545_v40, %s1077_s8 }
  0xa5   : > { %469 = vrot.lane.b32.xlu1 %v452_v33, %s1073_s18 }
  0xa7   : > { %566 = vrot.lane.b32.xlu0 %v522_v35, %s1074_s27 }
  0xa9   : > { %501 = vrot.lane.b32.xlu1 %v452_v33, %s1075_s7 }
  0xab   : > { %592 = vrot.lane.b32.xlu0 %v589_v42, %s1072_s17 }
  0xad   : > { %493 = vrot.lane.b32.xlu1 %v488_v43, %s1076_s6 }
  0xaf   : > { %603 = vrot.lane.b32.xlu0 %v589_v42, %s1073_s18 }
  0xb1   : > { %523 = vrot.lane.b32.xlu1 %v518_v45, %s1069_s14  ;;  %s792_s14 = sld [smem:[#allocation11 + $0x1]] }
  0xb3   : > { %633 = vrot.lane.b32.xlu0 %v589_v42, %s1075_s7 }
  0xb5   : > { %553 = vrot.lane.b32.xlu1 %v518_v45, %s1070_s15  ;;  %s394_s15 = sld [smem:[#allocation13]] }
  0xb7   : > { %626 = vrot.lane.b32.xlu0 %v623_v47, %s1076_s6  ;;  %v338_v11 = vstv %s792_s14  ;;  %s810_s14 = sld [smem:[#allocation13 + $0x11]] }
  0xb9   : > { %546 = vrot.lane.b32.xlu1 %v541_v48, %s1077_s8  ;;  %s802_s8 = sld [smem:[#allocation13 + $0x9]] }
  0xbb   : > { %v395_v36 = vstv %s394_s15  ;;  %s813_s15 = sshll.u32 %s1133_s3, 6  ;;  %s1078_s3 = smov [#allocation15]  }
  0xbc   : > { %s992_s30 = sshll.u32 %s1078_s3, 4  ;;  %s993_s30 = int_to_ptr.vmem [resolvable:$false] %s992_s30 }
  0xbd   : > { %564 = vrot.lane.b32.xlu1 %v518_v45, %s1074_s27  ;;  %s798_s27 = sld [smem:[#allocation13 + $0x5]] }
  0xc1   : > { %590 = vrot.lane.b32.xlu1 %v585_v49, %s1072_s17  ;;  %s795_s17 = sld [smem:[#allocation13 + $0x2]] }
  0xc5   : > { %601 = vrot.lane.b32.xlu1 %v585_v49, %s1073_s18  ;;  %s796_s18 = sld [smem:[#allocation13 + $0x3]] }
  0xc7   : > { %v428_v44 = vstv %s795_s17  ;;  %s675_s17 = sshll.u32 %s279_s16, 4  ;;  %s1410_s17 = int_to_ptr.vmem [resolvable:$true] %s675_s17 }
  0xc8   : > { %p995_p2 = scmp.lt.s32.totalorder %s1410_s17, %s993_s30 }
  0xc9   : > { %631 = vrot.lane.b32.xlu1 %v585_v49, %s1075_s7  ;;  %s799_s7 = sld [smem:[#allocation13 + $0x6]] }
  0xcd   : > { %624 = vrot.lane.b32.xlu1 %v619_v50, %s1076_s6  ;;  %s801_s6 = sld [smem:[#allocation13 + $0x8]] }
  0xf7   : > { %v387_v12 = vpop.permute.xlu1 %386 }
  0xfa   : > { %v284_v51 = vpop.xlane.xlu0 %283 }
  0xfb   : > { %309 = vst.msk [vmem:[#allocation2 + $0x8] sm:$0xf] %vm304_vm2, %v284_v51  ;;  %v389_v17 = vpop.permute.xlu1 %388 }
  0xfc   : > { %v391_v33 = vsel %vm390_vm4, %v387_v12, %v389_v17 }
  0xfd   : > { %v393_v1 = vsel %vm1352_vm5, %v391_v33, 0.0 }
  0xfe   : > { %v287_v52 = vpop.xlane.xlu0 %286  ;;  %v396_v37 = vmul.f32 %v395_v36, %v393_v1 }
  0xff   : > { %310 = vst.msk [vmem:[#allocation3 + $0x8] sm:$0xf] %vm304_vm2, %v287_v52  ;;  %v422_v19 = vpop.permute.xlu1 %421  ;;  %v439_v52 = vstv %s796_s18 }
 0x100   : > { %v397_v43 = vadd.f32 %v396_v37, %v373_v38 }
 0x102   : > { %v312_v55 = vld [vmem:[#allocation2 + $0x7] sm:$0xf]  ;;  %v420_v30 = vpop.permute.xlu0 %419 }
 0x103   : > { %v316_v56 = vld [vmem:[#allocation2 + $0x8] sm:$0xf]  ;;  %v314_v59 = vmul.f32 %v313_v53, %v312_v55  ;;  %v432_v22 = vpop.permute.xlu1 %431  ;;  %v424_v40 = vsel %vm423_vm6, %v420_v30, %v422_v19 }
 0x104   : > { %v321_v57 = vld [vmem:[#allocation2 + $0x9] sm:$0xf]  ;;  %v318_v60 = vmul.f32 %v317_v54, %v316_v56  ;;  %v426_v45 = vsel %vm1359_vm7, %v424_v40, 0.0  ;;  %v442_v56 = vld [vmem:[#allocation4 + $0x1] sm:$0x1] }
 0x105   : > { %v323_v62 = vmul.f32 %v322_v58, %v321_v57  ;;  %v429_v48 = vmul.f32 %v428_v44, %v426_v45  ;;  %v444_v57 = vstv %s797_s24 }
 0x106   : > { %v319_v61 = vadd.f32 %v318_v60, %v314_v59  ;;  %v326_v63 = vld [vmem:[#allocation3 + $0x7] sm:$0xf]  ;;  %v460_v34 = vpop.permute.xlu0 %459 }
 0x107   : > { %v328_v2 = vld [vmem:[#allocation3 + $0x8] sm:$0xf]  ;;  %v327_v5 = vmul.f32 %v326_v63, %v313_v53  ;;  %v434_v24 = vpop.permute.xlu1 %433  ;;  %v466_v63 = vstv %s798_s27  ;;  %s1408_s27 = scalar_lea.hbm %s1456_s5, %s813_s15 }
 0x108   : > { %v331_v3 = vld [vmem:[#allocation3 + $0x9] sm:$0xf]  ;;  %v324_v4 = vadd.f32 %v323_v62, %v319_v61  ;;  %v329_v6 = vmul.f32 %v328_v2, %v317_v54  ;;  %v435_v47 = vsel %vm301_vm1, %v432_v22, %v434_v24  ;;  %v445_v62 = vmul.f32 %v444_v57, %v442_v56 }
 0x109   : > { %v332_v9 = vmul.f32 %v331_v3, %v322_v58  ;;  %v437_v53 = vsel %vm1352_vm5, %v435_v47, 0.0  ;;  %v577_v47 = vstv %s806_s11 }
 0x10a   : > { %v325_v7 = vmul.f32 0.0078125, %v324_v4  ;;  %v330_v8 = vadd.f32 %v329_v6, %v327_v5  ;;  %v472_v41 = vpop.permute.xlu0 %471  ;;  %v440_v54 = vmul.f32 %v439_v52, %v437_v53  ;;  %v598_v53 = vstv %s807_s13 }
 0x10b   : > { %v458_v25 = vpop.permute.xlu1 %457 }
 0x10c   : > { %v333_v13 = vadd.f32 %v332_v9, %v330_v8  ;;  %v339_v15 = vmul.f32 %v338_v11, %v325_v7  ;;  %v462_v58 = vsel %vm461_vm9, %v458_v25, %v460_v34  ;;  %v478_v8 = vstv %s799_s7  ;;  %s662_s7 = scalar_lea.sflag [#allocation9], %s1265_s12 }
 0x10d   : > { %v464_v2 = vsel %vm1359_vm7, %v462_v58, 0.0  ;;  %v531_v25 = vstv %s802_s8  ;;  %v561_v34 = vstv %s804_s9  ;;  %s994_s8 = scalar_lea.vmem %s993_s30, 128 }
 0x10e   : > { %v336_v14 = vmul.f32 %v335_v10, %v333_v13  ;;  %v504_v50 = vpop.permute.xlu0 %503  ;;  %v467_v4 = vmul.f32 %v466_v63, %v464_v2 }
 0x10f   : > { %v411_v31 = vpop.permute.xlu1 %410 }
 0x110   : > { %v340_v16 = vadd.f32 %v339_v15, %v336_v14 }
 0x112   : > { %v793_v18 = vmul.f32 -1.442695, %v340_v16  ;;  %v496_v59 = vpop.permute.xlu0 %495  ;;  %v510_v16 = vstv %s801_s6  ;;  %s988_s6 = scalar_lea.vmem %s1410_s17, 64 }
 0x113   : > { %v413_v35 = vpop.permute.xlu1 %412  ;;  %p989_p11 = scmp.ne.s32.totalorder %s1410_s17, %s988_s6  ;;  %p996_p4 = scmp.lt.s32.totalorder %s994_s8, %s988_s6 }
 0x114   : > { %905 = vpow2.f32 %v793_v18  ;;  %v415_v46 = vsel %vm414_vm8, %v411_v31, %v413_v35 }
 0x115   : > { %v417_v49 = vadd.f32 %v415_v46, %v397_v43  ;;  %v575_v46 = vld [vmem:[#allocation5 + $0x1] sm:$0x1]  ;;  %p990_p13 = pnand %p989_p11, %p1212_p0  ;;  %p997_p6 = por %p996_p4, %p995_p2 }
 0x116   : > { %v526_v6 = vpop.permute.xlu0 %525  ;;  %v578_v52 = vmul.f32 %v577_v47, %v575_v46 }
 0x117   : > { %v470_v42 = vpop.permute.xlu1 %469  ;;  %v430_v55 = vadd.f32 %v429_v48, %v417_v49  ;;  %p991_p3 = pneg %p990_p13 }
 0x118   : > { %v474_v3 = vsel %vm473_vm10, %v470_v42, %v472_v41  ;;  %v572_v42 = vstv %s805_s10 }
 0x119   : > { %v441_v61 = vadd.f32 %v440_v54, %v430_v55  ;;  %v476_v9 = vsel %vm1352_vm5, %v474_v3, 0.0  ;;  %p998_p8 = pnand %p997_p6, %p991_p3 }
 0x11a   : > { %v479_v10 = vmul.f32 %v478_v8, %v476_v9  ;;  %v556_v13 = vpop.permute.xlu0 %555 }
 0x11b   : > { %v502_v51 = vpop.permute.xlu1 %501  ;;  %v446_v5 = vadd.f32 %v445_v62, %v441_v61 }
 0x11c   : > { %v506_v12 = vsel %vm505_vm11, %v502_v51, %v504_v50 }
 0x11d   : > { %v468_v11 = vadd.f32 %v467_v4, %v446_v5  ;;  %v508_v17 = vsel %vm1359_vm7, %v506_v12, 0.0 }
 0x11e   : > { %v906_v21 = vpop.eup %905 }
 0x11f   : > { %v344_v23 = vadd.f32 1.0, %v906_v21  ;;  %v494_v60 = vpop.permute.xlu1 %493  ;;  %v480_v15 = vadd.f32 %v479_v10, %v468_v11  ;;  %v511_v21 = vmul.f32 %v510_v16, %v508_v17 }
 0x120   : > { %v498_v18 = vsel %vm497_vm12, %v494_v60, %v496_v59  ;;  %v609_v60 = vstv %s808_s25 }
 0x121   : > { %907 = vrcp.f32 %v344_v23  ;;  %v500_v22 = vadd.f32 %v498_v18, %v480_v15  ;;  %v549_v23 = vpop.permute.xlu0 %548 }
 0x123   : > { %v524_v7 = vpop.permute.xlu1 %523  ;;  %v512_v27 = vadd.f32 %v511_v21, %v500_v22 }
 0x124   : > { %v527_v19 = vsel %vm390_vm4, %v524_v7, %v526_v6  ;;  %v639_v6 = vstv %s810_s14 }
 0x125   : > { %v567_v30 = vpop.permute.xlu0 %566 }
 0x127   : > { %v554_v14 = vpop.permute.xlu1 %553 }
 0x128   : > { %v557_v29 = vsel %vm423_vm6, %v554_v14, %v556_v13 }
 0x129   : > { %v559_v35 = vsel %vm1359_vm7, %v557_v29, 0.0  ;;  %v593_v40 = vpop.permute.xlu0 %592 }
 0x12a   : > { %v562_v37 = vmul.f32 %v561_v34, %v559_v35 }
 0x12b   : > { %v908_v26 = vpop.eup %907  ;;  %v547_v24 = vpop.permute.xlu1 %546 }
 0x12c   : > { %v347_v28 = vmul.f32 0.5, %v908_v26  ;;  %v529_v26 = vsel %vm1352_vm5, %v527_v19, 0.0  ;;  %v550_v36 = vsel %vm414_vm8, %v547_v24, %v549_v23 }
 0x12d   : > { %v604_v49 = vpop.permute.xlu0 %603 }
 0x12e   : > { %651 = vperm.xlu1 %903, %v347_v28   ;;  %v532_v28 = vmul.f32 %v531_v25, %v529_v26 }
 0x12f   : > { %v565_v31 = vpop.permute.xlu1 %564 }
 0x130   : > { %v533_v33 = vadd.f32 %v532_v28, %v512_v27  ;;  %v568_v1 = vsel %vm301_vm1, %v565_v31, %v567_v30 }
 0x131   : > { %v570_v43 = vsel %vm1352_vm5, %v568_v1, 0.0  ;;  %v634_v58 = vpop.permute.xlu0 %633 }
 0x132   : > { %v552_v38 = vadd.f32 %v550_v36, %v533_v33  ;;  %v573_v45 = vmul.f32 %v572_v42, %v570_v43 }
 0x133   : > { %v591_v41 = vpop.permute.xlu1 %590 }
 0x134   : > { %v563_v44 = vadd.f32 %v562_v37, %v552_v38  ;;  %v594_v48 = vsel %vm461_vm9, %v591_v41, %v593_v40 }
 0x135   : > { %v596_v54 = vsel %vm1359_vm7, %v594_v48, 0.0  ;;  %v627_v3 = vpop.permute.xlu0 %626 }
 0x136   : > { %v574_v51 = vadd.f32 %v573_v45, %v563_v44  ;;  %v599_v57 = vmul.f32 %v598_v53, %v596_v54 }
 0x137   : > { %v602_v50 = vpop.permute.xlu1 %601 }
 0x138   : > { %v605_v55 = vsel %vm473_vm10, %v602_v50, %v604_v49  ;;  %v579_v56 = vadd.f32 %v578_v52, %v574_v51 }
 0x139   : > { %v607_v61 = vsel %vm1352_vm5, %v605_v55, 0.0 }
 0x13a   : > { %v600_v62 = vadd.f32 %v599_v57, %v579_v56  ;;  %v610_v63 = vmul.f32 %v609_v60, %v607_v61 }
 0x13b   : > { %v632_v59 = vpop.permute.xlu1 %631 }
 0x13c   : > { %v635_v2 = vsel %vm505_vm11, %v632_v59, %v634_v58  ;;  %v611_v5 = vadd.f32 %v610_v63, %v600_v62 }
 0x13d   : > { %v637_v7 = vsel %vm1359_vm7, %v635_v2, 0.0 }
 0x13e   : > { %v640_v9 = vmul.f32 %v639_v6, %v637_v7 }
 0x13f   : > { %v625_v4 = vpop.permute.xlu1 %624 }
 0x140   : > { %v628_v8 = vsel %vm497_vm12, %v625_v4, %v627_v3 }
 0x141   : > { %v630_v10 = vadd.f32 %v628_v8, %v611_v5 }
 0x143   : > { %v641_v32 = vadd.f32 %v640_v9, %v630_v10 }
 0x145   : > { %v811_v11 = vmul.f32 -1.442695, %v641_v32 }
 0x147   : > { %909 = vpow2.f32 %v811_v11 }
 0x151   : > { %v910_v12 = vpop.eup %909 }
 0x152   : > { %v645_v13 = vadd.f32 1.0, %v910_v12 }
 0x154   : > { %911 = vrcp.f32 %v645_v13 }
 0x15e   : > { %v912_v14 = vpop.eup %911 }
 0x15f   : > { %v648_v15 = vmul.f32 0.5, %v912_v14 }
 0x161   : > { %v657_v16 = vrot.slane %v648_v15, %v1301_v20 }
 0x1ad   : > { %v652_v17 = vpop.permute.xlu1 %651 }
 0x1ae   : > { %v658_v39 = vadd.f32 %v657_v16, %v652_v17 }
 0x1b0   : > { %v659_v18 = vmul.f32 %v658_v39, %v1275_v0 }
 0x1b2   : > { %660 = vst [vmem:[%s279_s16] sm:$0xf] %v659_v18 }
 0x1b3   : > { %1001 = shalt.err (!%p998_p8)
}
 0x1b4   : > { %s1002_s12 = scalar_lea.hbm %s1408_s27, 64  ;;  %s1006_s11 = scalar_lea.hbm %s1456_s5, 256 }
 0x1b5   : > { %p1003_p5 = scmp.ne.s32.totalorder %s1408_s27, %s1002_s12  ;;  %p1007_p7 = scmp.lt.u32.totalorder %s1408_s27, %s1456_s5 }
 0x1b6   : > { %p1008_p9 = scmp.lt.u32.totalorder %s1006_s11, %s1002_s12  ;;  %p1010_p11 = scmp.lt.u32.totalorder %s1002_s12, %s1408_s27 }
 0x1b7   : > { %p1004_p1 = pnand %p1003_p5, %p1212_p0 }
 0x1b8   : > { %p1009_p10 = por %p1008_p9, %p1007_p7 }
 0x1b9   : > { %p1005_p12 = pneg %p1004_p1 }
 0x1ba   : > { %p1011_p13 = por %p1010_p11, %p1009_p10 }
 0x1bc   : > { %p1012_p3 = pnand %p1011_p13, %p1005_p12 }
 0x1be   : > { %1015 = shalt.err (!%p1012_p3)
}
 0x1bf   : > { %830 = dma.vmem_to_hbm [thread:$0]  (%p1212_p0), %s1410_s17, 64, %s1408_s27, %s662_s7  }
 0x1c0 PF: > { %p857_p2 = scmp.ge.s32.totalorder %s1062_s23, 2  ;;  %s687_s14 = sand.u32 1, %s1050_s20  }
 0x1c1   : > { %p1479_p4 = scmp.ne.s32.totalorder %s1461_s26, 0  ;;  %s688_s15 = scalar_lea.sflag [#allocation9], %s687_s14 }
 0x1c3   : > { %p847_p6 = pnand %p857_p2, %p1479_p4 }
 0x1c5   : > { %1045 = dma.done.wait (!%p847_p6), %s688_s15, 64  }
 0x1c6   : > { %1047 = vsyncadd (!%p847_p6), %s688_s15, 4294967232  ;;  %p21_p8 = scmp.ge.s32.totalorder %s1198_s19, 6   ;;  %s1480_s20 = smov %s1054_s21 }
 0x1c7   : > { %s1481_s21 = smov %s1058_s22  ;;  %s1482_s22 = smov %s1208_s28 }
 0x1c8   : > { %s1483_s23 = smov %s1198_s19  ;;  %23 = sbr.rel (!%p21_p8) target bundleno = 9 (0x9), region = 98 }
 0x1cf   :  { %693 = vsyncpa [#allocation8], 1 }
 0x1d0   :  { %695 = vsyncpa [#allocation8 + $0x1], 1 }
 0x1d1   :  { %696 = vsyncpa [#allocation9], 1 }
 0x1d2   :  { %698 = vsyncpa [#allocation9 + $0x1], 1 }
 0x1d3   :  { %699 = vsyncpa [#allocation10], 1 }
 0x1d4   :  { %701 = vsyncpa [#allocation10 + $0x1], 1 }
 0x1d5   :  { %702 = vsyncpa [#allocation12], 1 }

</bundles_post_ra>
